<compile_context>
chip_gen: v6e
topology: v6e:2x2x1
jax: 0.10.0
libtpu: 0.0.40
codegen_flags: <defaults>
</compile_context>

<pallas_src>
import functools

import jax
import jax.numpy as jnp
from jax.experimental import pallas as pl
from jax.experimental.pallas import tpu as pltpu


_VMEM_LIMIT = 32 * 1024 * 1024  # explicit scoped-VMEM budget (safe on v5e/v6e/v7x)


def _cparams(dims):
    return pltpu.CompilerParams(dimension_semantics=dims,
                                vmem_limit_bytes=_VMEM_LIMIT)


def _round_up(x, m):
    return ((x + m - 1) // m) * m


# ----------------------------------------------------------------------------
# Conv layout glue (XLA, size-preserving): pad, space-to-depth, flatten
# ----------------------------------------------------------------------------
def _prep_conv_input(h_nhwc, stride):
    """Pad (p=1) and, for stride 2, space-to-depth so every conv becomes a
    stride-1 window sum over a flattened (HP*WP, C') image."""
    n, H, W, C = h_nhwc.shape
    xp = jnp.pad(h_nhwc.astype(jnp.bfloat16), ((0, 0), (1, 1), (1, 1), (0, 0)))
    HP, WP = H + 2, W + 2
    if stride == 2:
        assert HP % 2 == 0 and WP % 2 == 0, "stride-2 conv needs even spatial dims"
        xp = (xp.reshape(n, HP // 2, 2, WP // 2, 2, C)
                .transpose(0, 1, 3, 2, 4, 5)
                .reshape(n, HP // 2, WP // 2, 4 * C))
        HP, WP, C, K = HP // 2, WP // 2, 4 * C, 2
    else:
        K = 4
    OH, OW = HP - K + 1, WP - K + 1
    L = (OH - 1) * WP + OW                       # rows actually needed (incl. wrap junk)
    offs = tuple(dh * WP + dw for dh in range(K) for dw in range(K))
    geom = dict(N=n, HP=HP, WP=WP, CIN=C, OH=OH, OW=OW, L=L, offs=offs)
    return xp.reshape(n, HP * WP, C), geom


def _prep_conv_weight(w, stride):
    """(4,4,Cin,Cout) -> (T, Cin', Cout) bf16 taps, re-ordered for s2d inputs."""
    _, _, C, Cout = w.shape
    if stride == 2:
        w = (w.reshape(2, 2, 2, 2, C, Cout)
               .transpose(0, 2, 1, 3, 4, 5)      # (kh', kw', ph, pw, C, Cout)
               .reshape(2, 2, 4 * C, Cout))
    T = w.shape[0] * w.shape[1]
    return w.reshape(T, w.shape[2], Cout).astype(jnp.bfloat16)


def _valid_mask(geom):
    """(L,1) f32 mask: 1 for real output positions, 0 for wrap-junk rows."""
    r = jnp.arange(geom["L"], dtype=jnp.int32)
    return ((r % geom["WP"]) < geom["OW"]).astype(jnp.float32).reshape(geom["L"], 1)


def _strip_junk(y_flat, geom, cout):
    """(N, L, Cout) wrap-junk layout -> (N, OH, OW, Cout)."""
    N, OH, OW, WP, L = geom["N"], geom["OH"], geom["OW"], geom["WP"], geom["L"]
    y = jnp.pad(y_flat, ((0, 0), (0, OH * WP - L), (0, 0)))
    return y.reshape(N, OH, WP, cout)[:, :, :OW, :]


# ----------------------------------------------------------------------------
# Pallas kernels: in-VMEM windowed conv (per image), fused epilogues
# ----------------------------------------------------------------------------
def _conv_bias_lrelu_kernel(x_ref, w_ref, b_ref, o_ref, *, offs, L, slope):
    # x_ref: (HP*WP, CIN) bf16, w_ref: (T, CIN, COUT) bf16, b_ref: (1, COUT) f32
    acc = jnp.dot(x_ref[pl.ds(offs[0], L), :], w_ref[0],
                  preferred_element_type=jnp.float32)
    for t in range(1, len(offs)):
        acc = acc + jnp.dot(x_ref[pl.ds(offs[t], L), :], w_ref[t],
                            preferred_element_type=jnp.float32)
    y = acc + b_ref[...]
    o_ref[...] = jnp.where(y >= 0.0, y, slope * y).astype(o_ref.dtype)


def _conv_stats_kernel(x_ref, w_ref, m_ref, o_ref, s1_ref, s2_ref, *, offs, L):
    # conv (no bias) + fused per-image masked BatchNorm statistics.
    acc = jnp.dot(x_ref[pl.ds(offs[0], L), :], w_ref[0],
                  preferred_element_type=jnp.float32)
    for t in range(1, len(offs)):
        acc = acc + jnp.dot(x_ref[pl.ds(offs[t], L), :], w_ref[t],
                            preferred_element_type=jnp.float32)
    m = m_ref[...]                                              # (L, 1)
    s1_ref[...] = jnp.sum(acc * m, axis=0, keepdims=True)       # (1, COUT)
    s2_ref[...] = jnp.sum(acc * acc * m, axis=0, keepdims=True)
    o_ref[...] = acc.astype(o_ref.dtype)                        # bf16 writeback


def _bn_lrelu_kernel(y_ref, sc_ref, sh_ref, o_ref, *, slope):
    v = y_ref[...].astype(jnp.float32) * sc_ref[...] + sh_ref[...]
    o_ref[...] = jnp.where(v >= 0.0, v, slope * v).astype(o_ref.dtype)


def _final_sum_kernel(x_ref, w_ref, m_ref, o_ref, *, offs, L):
    # final 1-channel conv fused with a masked sum of (bias-less) logits.
    acc = jnp.dot(x_ref[pl.ds(offs[0], L), :], w_ref[0],
                  preferred_element_type=jnp.float32)
    for t in range(1, len(offs)):
        acc = acc + jnp.dot(x_ref[pl.ds(offs[t], L), :], w_ref[t],
                            preferred_element_type=jnp.float32)
    o_ref[...] = jnp.sum(acc * m_ref[...], axis=(0, 1), keepdims=True)


def _final_hinge_kernel(x_ref, w_ref, m_ref, b_ref, o_real_ref, o_fake_ref, *,
                        offs, L):
    # final 1-channel conv fused with the two hinge-loss partial sums.
    acc = jnp.dot(x_ref[pl.ds(offs[0], L), :], w_ref[0],
                  preferred_element_type=jnp.float32)
    for t in range(1, len(offs)):
        acc = acc + jnp.dot(x_ref[pl.ds(offs[t], L), :], w_ref[t],
                            preferred_element_type=jnp.float32)
    v = acc + b_ref[0]                                          # SMEM scalar bias
    m = m_ref[...]
    o_real_ref[...] = jnp.sum(jnp.maximum(1.0 - v, 0.0) * m,
                              axis=(0, 1), keepdims=True)
    o_fake_ref[...] = jnp.sum(jnp.maximum(1.0 + v, 0.0) * m,
                              axis=(0, 1), keepdims=True)


def _sq_diff_sum_kernel(x_ref, r_ref, o_ref):
    d = x_ref[...] - r_ref[...]
    o_ref[...] = jnp.sum(d * d, axis=(0, 1), keepdims=True)


def _kl_sum_kernel(m_ref, lv_ref, o_ref):
    m = m_ref[...]
    lv = lv_ref[...]
    o_ref[...] = jnp.sum(0.5 * (m * m + jnp.exp(lv) - 1.0 - lv),
                         axis=(0, 1), keepdims=True)


# ----------------------------------------------------------------------------
# Conv-layer wrappers
# ----------------------------------------------------------------------------
def conv2d_bias_lrelu(h_nhwc, w, bias, stride, slope=0.2):
    x_flat, g = _prep_conv_input(h_nhwc, stride)
    wt = _prep_conv_weight(w, stride)
    T, CIN, COUT = wt.shape
    N, LP, L = g["N"], g["HP"] * g["WP"], g["L"]
    y = pl.pallas_call(
        functools.partial(_conv_bias_lrelu_kernel, offs=g["offs"], L=L,
                          slope=slope),
        grid=(N,),
        in_specs=[pl.BlockSpec((None, LP, CIN), lambda n: (n, 0, 0)),
                  pl.BlockSpec((T, CIN, COUT), lambda n: (0, 0, 0)),
                  pl.BlockSpec((1, COUT), lambda n: (0, 0))],
        out_specs=pl.BlockSpec((None, L, COUT), lambda n: (n, 0, 0)),
        out_shape=jax.ShapeDtypeStruct((N, L, COUT), jnp.bfloat16),
        compiler_params=_cparams(("parallel",)),
    )(x_flat, wt, bias.reshape(1, COUT).astype(jnp.float32))
    return _strip_junk(y, g, COUT)


def conv2d_bn_lrelu(h_nhwc, w, gamma, beta, stride, n_real, slope=0.2, eps=1e-5):
    """Conv (bias=False) + training-mode BatchNorm + LeakyReLU.

    BN batch statistics are computed per group: images [0, n_real) and
    [n_real, N) get independent stats (matching the reference's two separate
    discriminator calls on real / fake batches)."""
    x_flat, g = _prep_conv_input(h_nhwc, stride)
    wt = _prep_conv_weight(w, stride)
    T, CIN, COUT = wt.shape
    N, LP, L = g["N"], g["HP"] * g["WP"], g["L"]
    mask = _valid_mask(g)

    y, s1, s2 = pl.pallas_call(
        functools.partial(_conv_stats_kernel, offs=g["offs"], L=L),
        grid=(N,),
        in_specs=[pl.BlockSpec((None, LP, CIN), lambda n: (n, 0, 0)),
                  pl.BlockSpec((T, CIN, COUT), lambda n: (0, 0, 0)),
                  pl.BlockSpec((L, 1), lambda n: (0, 0))],
        out_specs=[pl.BlockSpec((None, L, COUT), lambda n: (n, 0, 0)),
                   pl.BlockSpec((None, 1, COUT), lambda n: (n, 0, 0)),
                   pl.BlockSpec((None, 1, COUT), lambda n: (n, 0, 0))],
        out_shape=[jax.ShapeDtypeStruct((N, L, COUT), jnp.bfloat16),
                   jax.ShapeDtypeStruct((N, 1, COUT), jnp.float32),
                   jax.ShapeDtypeStruct((N, 1, COUT), jnp.float32)],
        compiler_params=_cparams(("parallel",)),
    )(x_flat, wt, mask)

    # ---- per-group BN stats on tiny (N, C) data: pure XLA glue -------------
    # NOTE: single-pass E[x^2]-E[x]^2 in f32 (clamped); acceptable here.
    cnt_valid = g["OH"] * g["OW"]
    groups = [(0, n_real), (n_real, N)] if 0 < n_real < N else [(0, N)]
    gamma32, beta32 = gamma.astype(jnp.float32), beta.astype(jnp.float32)
    sc_list, sh_list = [], []
    for a, b in groups:
        cnt = (b - a) * cnt_valid
        mean = jnp.sum(s1[a:b, 0, :], axis=0) / cnt
        var = jnp.maximum(jnp.sum(s2[a:b, 0, :], axis=0) / cnt - mean * mean, 0.0)
        sc = gamma32 * jax.lax.rsqrt(var + eps)
        sh = beta32 - mean * sc
        sc_list.append(jnp.broadcast_to(sc, (b - a, COUT)))
        sh_list.append(jnp.broadcast_to(sh, (b - a, COUT)))
    sc_img = jnp.concatenate(sc_list, axis=0).reshape(N, 1, COUT)
    sh_img = jnp.concatenate(sh_list, axis=0).reshape(N, 1, COUT)

    yn = pl.pallas_call(
        functools.partial(_bn_lrelu_kernel, slope=slope),
        grid=(N,),
        in_specs=[pl.BlockSpec((None, L, COUT), lambda n: (n, 0, 0)),
                  pl.BlockSpec((None, 1, COUT), lambda n: (n, 0, 0)),
                  pl.BlockSpec((None, 1, COUT), lambda n: (n, 0, 0))],
        out_specs=pl.BlockSpec((None, L, COUT), lambda n: (n, 0, 0)),
        out_shape=jax.ShapeDtypeStruct((N, L, COUT), jnp.bfloat16),
        compiler_params=_cparams(("parallel",)),
    )(y, sc_img, sh_img)
    return _strip_junk(yn, g, COUT)


def final_conv_mean(h_nhwc, w, bias):
    """mean over all logits of the final 1-channel conv (bias folded in)."""
    x_flat, g = _prep_conv_input(h_nhwc, 1)
    wt = _prep_conv_weight(w, 1)
    T, CIN, COUT = wt.shape
    N, LP, L = g["N"], g["HP"] * g["WP"], g["L"]
    mask = _valid_mask(g)
    sums = pl.pallas_call(
        functools.partial(_final_sum_kernel, offs=g["offs"], L=L),
        grid=(N,),
        in_specs=[pl.BlockSpec((None, LP, CIN), lambda n: (n, 0, 0)),
                  pl.BlockSpec((T, CIN, COUT), lambda n: (0, 0, 0)),
                  pl.BlockSpec((L, 1), lambda n: (0, 0))],
        out_specs=pl.BlockSpec((None, 1, 1), lambda n: (n, 0, 0)),
        out_shape=jax.ShapeDtypeStruct((N, 1, 1), jnp.float32),
        compiler_params=_cparams(("parallel",)),
    )(x_flat, wt, mask)
    total = N * g["OH"] * g["OW"]
    return jnp.sum(sums) / total + bias.astype(jnp.float32)[0]


def final_conv_hinge(h_nhwc, w, bias, n_real):
    """0.5*(mean(relu(1-logits_real)) + mean(relu(1+logits_fake)))."""
    x_flat, g = _prep_conv_input(h_nhwc, 1)
    wt = _prep_conv_weight(w, 1)
    T, CIN, COUT = wt.shape
    N, LP, L = g["N"], g["HP"] * g["WP"], g["L"]
    mask = _valid_mask(g)
    o_real, o_fake = pl.pallas_call(
        functools.partial(_final_hinge_kernel, offs=g["offs"], L=L),
        grid=(N,),
        in_specs=[pl.BlockSpec((None, LP, CIN), lambda n: (n, 0, 0)),
                  pl.BlockSpec((T, CIN, COUT), lambda n: (0, 0, 0)),
                  pl.BlockSpec((L, 1), lambda n: (0, 0)),
                  pl.BlockSpec(memory_space=pltpu.MemorySpace.SMEM)],
        out_specs=[pl.BlockSpec((None, 1, 1), lambda n: (n, 0, 0)),
                   pl.BlockSpec((None, 1, 1), lambda n: (n, 0, 0))],
        out_shape=[jax.ShapeDtypeStruct((N, 1, 1), jnp.float32),
                   jax.ShapeDtypeStruct((N, 1, 1), jnp.float32)],
        compiler_params=_cparams(("parallel",)),
    )(x_flat, wt, mask, bias.reshape(1).astype(jnp.float32))
    cnt = g["OH"] * g["OW"]
    n_fake = N - n_real
    loss_real = jnp.sum(o_real[:n_real]) / (n_real * cnt)
    loss_fake = jnp.sum(o_fake[n_real:]) / (n_fake * cnt)
    return 0.5 * (loss_real + loss_fake)


# ----------------------------------------------------------------------------
# NLL / KL tiled reductions (flattened, 8-sublane x 512-lane blocks, parallel)
# ----------------------------------------------------------------------------
_RED_LANES = 512
_RED_BLOCK_ROWS = 256


def _reduction_shape(total):
    rows = _round_up(max(1, pl.cdiv(total, _RED_LANES)), 8)
    tr = min(_RED_BLOCK_ROWS, rows)
    rows = _round_up(rows, tr)
    return rows, tr


def _flatten_pad(a, rows):
    flat = a.reshape(-1).astype(jnp.float32)
    return jnp.pad(flat, (0, rows * _RED_LANES - flat.shape[0])).reshape(
        rows, _RED_LANES)


def _blockwise_sum(kernel, arrays, rows, tr):
    nblk = rows // tr
    parts = pl.pallas_call(
        kernel,
        grid=(nblk,),
        in_specs=[pl.BlockSpec((tr, _RED_LANES), lambda i: (i, 0))
                  for _ in arrays],
        out_specs=pl.BlockSpec((None, 1, 1), lambda i: (i, 0, 0)),
        out_shape=jax.ShapeDtypeStruct((nblk, 1, 1), jnp.float32),
        compiler_params=_cparams(("parallel",)),
    )(*arrays)
    return jnp.sum(parts)


def nll_loss_fn(inputs, reconstructions, logvar):
    # sum((x-r)^2/exp(logvar) + logvar) / batch   (the given spec: pure MSE NLL)
    n = inputs.shape[0]
    total = inputs.size
    rows, tr = _reduction_shape(total)
    x = _flatten_pad(inputs, rows)
    r = _flatten_pad(reconstructions, rows)
    ssd = _blockwise_sum(_sq_diff_sum_kernel, (x, r), rows, tr)
    lv = jnp.asarray(logvar, jnp.float32)
    # padded zeros contribute 0 to ssd; +logvar term applied analytically.
    return (jnp.exp(-lv) * ssd + total * lv) / n


def kl_loss_fn(post_mean, post_logvar):
    # DiagonalGaussian.kl() summed over batch / batch_size
    n = post_mean.shape[0]
    total = post_mean.size
    rows, tr = _reduction_shape(total)
    m = _flatten_pad(post_mean, rows)
    lv = _flatten_pad(post_logvar, rows)
    # zero padding contributes 0.5*(0 + e^0 - 1 - 0) = 0 exactly.
    return _blockwise_sum(_kl_sum_kernel, (m, lv), rows, tr) / n


# ----------------------------------------------------------------------------
# NLayerDiscriminator parameters (PatchGAN, n_layers=2, BatchNorm)
# ----------------------------------------------------------------------------
def build_discriminator_params(key, input_nc, ndf=64, n_layers=2):
    specs = [(input_nc, ndf, 2, False)]
    nf_mult = 1
    for n in range(1, n_layers):
        nf_prev, nf_mult = nf_mult, min(2 ** n, 8)
        specs.append((ndf * nf_prev, ndf * nf_mult, 2, True))
    nf_prev, nf_mult = nf_mult, min(2 ** n_layers, 8)
    specs.append((ndf * nf_prev, ndf * nf_mult, 1, True))
    specs.append((ndf * nf_mult, 1, 1, False))

    params = []
    for cin, cout, stride, use_bn in specs:
        key, kw_, kb_, kg_ = jax.random.split(key, 4)
        layer = {
            # weights_init: conv weights ~ N(0, 0.02); stored (kh, kw, cin, cout)
            "w": 0.02 * jax.random.normal(kw_, (4, 4, cin, cout), jnp.float32),
            "stride": stride,
            "use_bn": use_bn,
        }
        if use_bn:
            layer["gamma"] = 1.0 + 0.02 * jax.random.normal(kg_, (cout,),
                                                            jnp.float32)
            layer["beta"] = jnp.zeros((cout,), jnp.float32)
        else:
            bound = 1.0 / (cin * 16) ** 0.5            # PyTorch default bias init
            layer["bias"] = jax.random.uniform(kb_, (cout,), jnp.float32,
                                               -bound, bound)
        params.append(layer)
    return params


# ----------------------------------------------------------------------------
# LPIPSWithDiscriminator forward
# ----------------------------------------------------------------------------
def adopt_weight(weight, global_step, threshold=0, value=0.0):
    # trace-safe version of `if global_step < threshold: weight = value`
    return jnp.where(jnp.asarray(global_step) < threshold, value, weight)


class LPIPSWithDiscriminatorPallas:
    def __init__(self, disc_start, logvar_init=0.0, kl_weight=1.0,
                 pixelloss_weight=1.0, disc_num_layers=2, disc_in_channels=1,
                 disc_factor=1.0, disc_weight=1.0, key=None):
        self.kl_weight = kl_weight
        self.pixel_weight = pixelloss_weight        # stored (unused by the spec)
        self.logvar = jnp.asarray(logvar_init, jnp.float32)
        self.disc_iter_start = disc_start
        self.disc_factor = disc_factor
        self.discriminator_weight = disc_weight
        self.disc_params = build_discriminator_params(
            key if key is not None else jax.random.PRNGKey(0),
            input_nc=disc_in_channels, n_layers=disc_num_layers)

    def _disc_trunk(self, x_nhwc, n_real):
        """All conv layers except the final 1-channel conv.

        `n_real` = number of leading images forming BN group A; the remaining
        images form group B, so real+fake share one trunk pass while keeping the
        reference's per-call BatchNorm batch statistics."""
        h = x_nhwc
        for layer in self.disc_params[:-1]:
            if layer["use_bn"]:
                h = conv2d_bn_lrelu(h, layer["w"], layer["gamma"],
                                    layer["beta"], layer["stride"], n_real)
            else:
                h = conv2d_bias_lrelu(h, layer["w"], layer["bias"],
                                      layer["stride"])
        return h

    def __call__(self, inputs, reconstructions, post_mean, post_logvar,
                 global_step, optimizer_idx):
        # inputs / reconstructions are NCHW (PyTorch convention)
        n = inputs.shape[0]
        nll = nll_loss_fn(inputs, reconstructions, self.logvar)
        kl = kl_loss_fn(post_mean, post_logvar)
        disc_factor = adopt_weight(self.disc_factor, global_step,
                                   threshold=self.disc_iter_start)
        last = self.disc_params[-1]

        if optimizer_idx == 0:
            rec_nhwc = jnp.transpose(reconstructions, (0, 2, 3, 1))
            h = self._disc_trunk(rec_nhwc, n_real=n)       # single BN group
            g_loss = -final_conv_mean(h, last["w"], last["bias"])
            # TODO(synk): reference's adaptive d_weight needs autograd w.r.t. the
            # generator's last layer; the spec's forward uses the constant.
            d_weight = self.discriminator_weight
            return nll + self.kl_weight * kl + d_weight * disc_factor * g_loss
        else:
            inp = jax.lax.stop_gradient(inputs)
            rec = jax.lax.stop_gradient(reconstructions)
            both = jnp.transpose(jnp.concatenate([inp, rec], axis=0),
                                 (0, 2, 3, 1))
            h = self._disc_trunk(both, n_real=n)           # two BN groups
            d_loss = disc_factor * final_conv_hinge(h, last["w"], last["bias"],
                                                    n_real=n)
            return d_loss


if __name__ == "__main__":
    key = jax.random.PRNGKey(0)
    k_in, k_rec, k_mu, k_lv, k_params = jax.random.split(key, 5)

    # NCHW images; posterior (DiagonalGaussian) mean / logvar of the latent
    inputs = jax.random.normal(k_in, (2, 4, 16, 16), jnp.float32)
    reconstructions = jax.random.normal(k_rec, (2, 4, 16, 16), jnp.float32)
    post_mean = jax.random.normal(k_mu, (2, 4, 4, 4), jnp.float32)
    post_logvar = 0.1 * jax.random.normal(k_lv, (2, 4, 4, 4), jnp.float32)

    model = LPIPSWithDiscriminatorPallas(
        disc_start=50, disc_in_channels=4, disc_num_layers=2, key=k_params)

    loss_gen = model(inputs, reconstructions, post_mean, post_logvar,
                     global_step=100, optimizer_idx=0)
    loss_disc = model(inputs, reconstructions, post_mean, post_logvar,
                      global_step=100, optimizer_idx=1)

    jax.block_until_ready((loss_gen, loss_disc))
    print("KERNEL_OK")
</pallas_src>

<mosaic_0001>
module attributes {stable_mosaic.version = 11 : i64} {
  func.func @_sq_diff_sum_kernel(%arg0: i32, %arg1: memref<8x512xf32, #tpu.memory_space<vmem>>, %arg2: memref<8x512xf32, #tpu.memory_space<vmem>>, %arg3: memref<1x1x1xf32, #tpu.memory_space<vmem>>) attributes {dimension_semantics = [#tpu.dimension_semantics<parallel>], iteration_bounds = array<i64: 1>, scalar_prefetch = 0 : i64, scratch_operands = 0 : i64, tpu.core_type = #tpu.core_type<tc>, window_params = [{transform_indices = @transform_0, window_bounds = array<i64: 8, 512>}, {transform_indices = @transform_1, window_bounds = array<i64: 8, 512>}, {transform_indices = @transform_2, window_bounds = array<i64: 1, 1, 1>}]} {
    %c0 = arith.constant 0 : index
    %c0_0 = arith.constant 0 : index
    %0 = vector.load %arg1[%c0, %c0_0] : memref<8x512xf32, #tpu.memory_space<vmem>>, vector<8x512xf32>
    %c0_1 = arith.constant 0 : index
    %c0_2 = arith.constant 0 : index
    %1 = vector.load %arg2[%c0_1, %c0_2] : memref<8x512xf32, #tpu.memory_space<vmem>>, vector<8x512xf32>
    %2 = arith.subf %0, %1 : vector<8x512xf32>
    %3 = arith.mulf %2, %2 : vector<8x512xf32>
    %4 = vector.shape_cast %3 : vector<8x512xf32> to vector<1x8x512xf32>
    %cst = arith.constant dense<0.000000e+00> : vector<1xf32>
    %5 = vector.multi_reduction <add>, %4, %cst [1, 2] : vector<1x8x512xf32> to vector<1xf32>
    %6 = vector.shape_cast %5 : vector<1xf32> to vector<1x1x1xf32>
    %7 = vector.extract %6[0, 0, 0] : f32 from vector<1x1x1xf32>
    %8 = vector.broadcast %7 : f32 to vector<1x1xf32>
    %c0_3 = arith.constant 0 : index
    %c0_4 = arith.constant 0 : index
    %c0_5 = arith.constant 0 : index
    %9 = vector.load %arg3[%c0_3, %c0_4, %c0_5] : memref<1x1x1xf32, #tpu.memory_space<vmem>>, vector<1x1x1xf32>
    %10 = vector.shape_cast %9 : vector<1x1x1xf32> to vector<1x1xf32>
    %11 = vector.shape_cast %8 : vector<1x1xf32> to vector<1x1x1xf32>
    tpu.vector_store %arg3[%c0_3, %c0_4, %c0_5], %11 {strides = array<i32>} : memref<1x1x1xf32, #tpu.memory_space<vmem>>, vector<1x1x1xf32>,
    return
  }
  func.func @transform_0(%arg0: i32) -> (i32, i32) {
    %c0_i32 = arith.constant 0 : i32
    %c0_i32_0 = arith.constant 0 : i32
    return %arg0, %c0_i32 : i32, i32
  }
  func.func @transform_1(%arg0: i32) -> (i32, i32) {
    %c0_i32 = arith.constant 0 : i32
    %c0_i32_0 = arith.constant 0 : i32
    return %arg0, %c0_i32 : i32, i32
  }
  func.func @transform_2(%arg0: i32) -> (i32, i32, i32) {
    %c0_i32 = arith.constant 0 : i32
    %c0_i32_0 = arith.constant 0 : i32
    %c0_i32_1 = arith.constant 0 : i32
    return %arg0, %c0_i32, %c0_i32_0 : i32, i32, i32
  }
}

</mosaic_0001>

<bundles_post_ra>
// kernel: tpu_custom_call.1
= control target key start
LH: loop header
LB: loop body
LE: loop exit
PB: predicated region body
PF: predicated region fallthrough
CT: control target
= control target key end

     0   :  { %7 = vsyncpa [#allocation3], 0  ;;  %s181_s0 = inlined_call_operand.hbm [shape: f32[8,512], index: 0, kind: input, shape index: {}]   ;;  %s182_s1 = inlined_call_operand.hbm [shape: f32[8,512], index: 1, kind: input, shape index: {}]   ;;  %s183_s2 = inlined_call_operand.hbm [shape: f32[1,1,1], index: 2, kind: output, shape index: {}]  }
   0x1   :  { %8 = vsyncpa [#allocation6], 0 }
   0x2   :  { %9 = vsyncpa [#allocation4], 0  ;;  %s154_s9 = smov [#allocation2]   ;;  %s155_s11 = smov [#allocation5]  }
   0x3   :  { %s16_s10 = sshll.u32 %s154_s9, 4  ;;  %s26_s12 = sshll.u32 %s155_s11, 4  ;;  %s17_s10 = int_to_ptr.vmem [resolvable:$true] %s16_s10  ;;  %s27_s12 = int_to_ptr.vmem [resolvable:$true] %s26_s12 }
   0x4   :  { %s96_s13 = scalar_lea.vmem %s17_s10, 512  ;;  %p101_p1 = scmp.lt.s32.totalorder %s17_s10, %s17_s10 }
   0x5   :  { %p97_p0 = scmp.ne.s32.totalorder %s17_s10, %s96_s13  ;;  %p102_p2 = scmp.lt.s32.totalorder %s96_s13, %s96_s13 }
   0x7   :  { %p103_p3 = por %p102_p2, %p101_p1 }
   0x9   :  { %p104_p4 = pnand %p103_p3, %p97_p0 }
   0xb   :  { %107 = shalt.err (!%p104_p4)
}
   0xc   :  { %19 = dma.hbm_to_vmem [thread:$0]  %s181_s0, 512, %s17_s10, [#allocation3]  }
   0xd   :  { %s116_s16 = scalar_lea.vmem %s27_s12, 512  ;;  %p121_p6 = scmp.lt.s32.totalorder %s27_s12, %s27_s12 }
   0xe   :  { %p117_p5 = scmp.ne.s32.totalorder %s27_s12, %s116_s16  ;;  %p122_p7 = scmp.lt.s32.totalorder %s116_s16, %s116_s16 }
  0x10   :  { %p123_p8 = por %p122_p7, %p121_p6 }
  0x12   :  { %p124_p9 = pnand %p123_p8, %p117_p5 }
  0x14   :  { %127 = shalt.err (!%p124_p9)
}
  0x15   :  { %29 = dma.hbm_to_vmem [thread:$0]  %s182_s1, 512, %s27_s12, [#allocation6]  }
  0x16   :  { %148 = dma.done.wait [#allocation3], 512  }
  0x17   :  { %149 = vsyncadd [#allocation3], 4294966784 }
  0x18   :  { %150 = dma.done.wait [#allocation6], 512  }
  0x19   :  { %151 = vsyncadd [#allocation6], 4294966784  ;;  %v36_v0 = vld [vmem:[#allocation2] sm:$0xff]  ;;  %v37_v1 = vld [vmem:[#allocation2 + $0x8] sm:$0xff]  ;;  %s156_s0 = smov [#allocation7]   ;;  %vm65_vm0 = vcmask 0  }
  0x1a   :  { %v38_v2 = vld [vmem:[#allocation2 + $0x10] sm:$0xff]  ;;  %v39_v3 = vld [vmem:[#allocation2 + $0x18] sm:$0xff]  ;;  %v40_v4 = vld [vmem:[#allocation5] sm:$0xff]  ;;  %s73_s1 = sshll.u32 %s156_s0, 4  ;;  %s74_s1 = int_to_ptr.vmem [resolvable:$true] %s73_s1 }
  0x1b   :  { %v41_v5 = vld [vmem:[#allocation5 + $0x8] sm:$0xff]  ;;  %v42_v6 = vld [vmem:[#allocation5 + $0x10] sm:$0xff]  ;;  %v43_v7 = vld [vmem:[#allocation5 + $0x18] sm:$0xff]  ;;  %v44_v8 = vsub.f32 %v36_v0, %v40_v4  ;;  %s128_s20 = scalar_lea.vmem %s74_s1, 16  ;;  %s132_s21 = scalar_lea.vmem %s74_s1, 32 }
  0x1c   :  { %v45_v9 = vsub.f32 %v37_v1, %v41_v5  ;;  %v46_v10 = vsub.f32 %v38_v2, %v42_v6  ;;  %v47_v11 = vsub.f32 %v39_v3, %v43_v7  ;;  %p129_p10 = scmp.ne.s32.totalorder %s74_s1, %s128_s20  ;;  %p133_p11 = scmp.lt.s32.totalorder %s74_s1, %s74_s1 }
  0x1d   :  { %v48_v12 = vmul.f32 %v44_v8, %v44_v8  ;;  %p134_p12 = scmp.lt.s32.totalorder %s132_s21, %s128_s20 }
  0x1e   :  { %v49_v13 = vmul.f32 %v45_v9, %v45_v9  ;;  %v50_v14 = vmul.f32 %v46_v10, %v46_v10  ;;  %v51_v15 = vmul.f32 %v47_v11, %v47_v11 }
  0x1f   :  { %p135_p13 = por %p134_p12, %p133_p11 }
  0x20   :  { %v52_v16 = vadd.f32 %v49_v13, %v48_v12 }
  0x21   :  { %p136_p0 = pnand %p135_p13, %p129_p10 }
  0x22   :  { %v53_v17 = vadd.f32 %v52_v16, %v50_v14 }
  0x24   :  { %v54_v18 = vadd.f32 %v53_v17, %v51_v15 }
  0x26   :  { %55 = vadd.xlane.f32.xlu0 %v54_v18 }
  0xaf   :  { %v56_v19 = vpop.xlane.xlu0 %55 }
  0xb0   :  { %v57_v20 = vrot.slane %v56_v19, 4 }
  0xb2   :  { %v58_v21 = vadd.f32 %v57_v20, %v56_v19 }
  0xb4   :  { %v59_v22 = vrot.slane %v58_v21, 2 }
  0xb6   :  { %v60_v23 = vadd.f32 %v59_v22, %v58_v21 }
  0xb8   :  { %v61_v24 = vrot.slane %v60_v23, 1 }
  0xba   :  { %v62_v25 = vadd.f32 %v61_v24, %v60_v23 }
  0xbc   :  { %83 = vpush %v62_v25 }
  0xed   :  { %s84_s19 = spop %83 }
  0xee   :  { %v64_v26 = vstv %s84_s19 }
  0xef   :  { %66 = vst.msk [vmem:[#allocation7] sm:$0x1] %vm65_vm0, %v64_v26 }
  0xf0   :  { %139 = shalt.err (!%p136_p0)
}
  0xf1   :  { %76 = dma.vmem_to_hbm [thread:$0]  %s74_s1, 16, %s183_s2, [#allocation4]  }
  0xf2   :  { %152 = dma.done.wait [#allocation4], 16  }
  0xf3   :  { %153 = vsyncadd [#allocation4], 4294967280 }
  0xf4   :  { %80 = vsyncpa [#allocation3], 1 }
  0xf5   :  { %81 = vsyncpa [#allocation6], 1 }
  0xf6   :  { %82 = vsyncpa [#allocation4], 1 }

</bundles_post_ra>
